<compile_context>
chip_gen: v6e
topology: v6e:2x2x1
jax: 0.10.0
libtpu: 0.0.40
codegen_flags: <defaults>
</compile_context>

<pallas_src>
import jax
import jax.numpy as jnp
from jax.experimental import pallas as pl
from jax.experimental.pallas import tpu as pltpu


def _round_up(n, m):
    return (n + m - 1) // m * m


def _mlp_kernel(x_ref, w1_ref, b1_ref, w2_ref, b2_ref, o_ref):
    # x_ref : (in_pad, TB)       bf16   batch on the lane axis (lane-dense)
    # w1_ref: (hid_pad, in_pad)  bf16   VMEM-resident
    # b1_ref: (hid_pad, 1)       f32
    # w2_ref: (out_pad, hid_pad) bf16   VMEM-resident
    # b2_ref: (out_pad, 1)       f32
    # o_ref : (out_pad, TB)      f32    lane-dense, sublane-aligned (8 rows)
    h = jnp.dot(w1_ref[...], x_ref[...],
                preferred_element_type=jnp.float32)              # (hid_pad, TB)
    h = jnp.maximum(h + b1_ref[...], 0.0)                        # ReLU, f32
    y = jnp.dot(w2_ref[...], h.astype(w2_ref.dtype),
                preferred_element_type=jnp.float32)              # (out_pad, TB)
    o_ref[...] = (y + b2_ref[...]).astype(o_ref.dtype)


def prepare_params(w1, b1, w2, b2, compute_dtype=jnp.bfloat16):
    """One-time parameter prep (off the hot path).

    PyTorch nn.Linear convention: w1 (50, 4), b1 (50,), w2 (3, 50), b2 (3,).
    Returns zero-padded, MXU-friendly params; padding is exactly inert
    (zero weight rows/cols + zero bias + ReLU(0) = 0).
    """
    w1 = jnp.asarray(w1, jnp.float32)
    b1 = jnp.asarray(b1, jnp.float32)
    w2 = jnp.asarray(w2, jnp.float32)
    b2 = jnp.asarray(b2, jnp.float32)
    hid, in_f = w1.shape
    out_f = w2.shape[0]
    hid_pad = _round_up(hid, 16)   # bf16 sublane packing
    in_pad = _round_up(in_f, 16)
    out_pad = _round_up(out_f, 8)  # f32 output tile: full (8,128) sublane alignment

    w1_p = jnp.zeros((hid_pad, in_pad), jnp.float32).at[:hid, :in_f].set(w1)
    b1_p = jnp.zeros((hid_pad, 1), jnp.float32).at[:hid, 0].set(b1)
    w2_p = jnp.zeros((out_pad, hid_pad), jnp.float32).at[:out_f, :hid].set(w2)
    b2_p = jnp.zeros((out_pad, 1), jnp.float32).at[:out_f, 0].set(b2)
    return (w1_p.astype(compute_dtype), b1_p,
            w2_p.astype(compute_dtype), b2_p), (in_f, hid, out_f)


def simple_nn_forward(x, params, dims):
    """x: (B, 4) -> (B, 3), same math as torch: fc2(relu(fc1(x)))."""
    w1_p, b1_p, w2_p, b2_p = params
    in_f, _, out_f = dims
    compute_dtype = w1_p.dtype
    x = jnp.asarray(x)
    B = x.shape[0]
    hid_pad, in_pad = w1_p.shape
    out_pad = w2_p.shape[0]

    # Batch tile: multiple of 128 (full lane width). Large enough to amortize the
    # ~0.35 us/step overhead; double-buffered working set stays well under VMEM
    # limits on v5e/v6e/v7x at this size.
    TB = 2048
    if B <= TB:
        TB = _round_up(max(B, 1), 128)
    B_pad = _round_up(B, TB)
    grid = (B_pad // TB,)

    # Feature-major, zero-padded input: (in_pad, B_pad) with batch on the lane axis.
    x_t = (jnp.zeros((in_pad, B_pad), compute_dtype)
           .at[:in_f, :B].set(x.astype(compute_dtype).T))

    out = pl.pallas_call(
        _mlp_kernel,
        out_shape=jax.ShapeDtypeStruct((out_pad, B_pad), jnp.float32),
        grid=grid,
        in_specs=[
            pl.BlockSpec((in_pad, TB), lambda i: (0, i)),        # x tile: pipelined
            pl.BlockSpec((hid_pad, in_pad), lambda i: (0, 0)),   # weights: resident
            pl.BlockSpec((hid_pad, 1), lambda i: (0, 0)),
            pl.BlockSpec((out_pad, hid_pad), lambda i: (0, 0)),
            pl.BlockSpec((out_pad, 1), lambda i: (0, 0)),
        ],
        out_specs=pl.BlockSpec((out_pad, TB), lambda i: (0, i)),  # lane-dense output
        compiler_params=pltpu.CompilerParams(
            dimension_semantics=("parallel",)),                   # megacore on v7x
    )(x_t, w1_p, b1_p, w2_p, b2_p)

    return out[:out_f, :B].T  # (B, out_f), f32


def init_params(key):
    """Deterministic init mirroring PyTorch nn.Linear default U(-1/sqrt(fan_in), ...)."""
    k1, k2, k3, k4 = jax.random.split(key, 4)
    bound1 = 1.0 / jnp.sqrt(4.0)
    bound2 = 1.0 / jnp.sqrt(50.0)
    w1 = jax.random.uniform(k1, (50, 4), jnp.float32, -bound1, bound1)
    b1 = jax.random.uniform(k2, (50,), jnp.float32, -bound1, bound1)
    w2 = jax.random.uniform(k3, (3, 50), jnp.float32, -bound2, bound2)
    b2 = jax.random.uniform(k4, (3,), jnp.float32, -bound2, bound2)
    return w1, b1, w2, b2


if __name__ == "__main__":
    key = jax.random.PRNGKey(0)
    kx, kp = jax.random.split(key)
    batch = 8
    x = jax.random.normal(kx, (batch, 4), jnp.float32)
    w1, b1, w2, b2 = init_params(kp)

    params, dims = prepare_params(w1, b1, w2, b2)

    out = simple_nn_forward(x, params, dims)
    out = jax.block_until_ready(out)

    # Reference: exact f32 PyTorch-convention math. bf16 matmul inputs => loose tol.
    ref = jnp.maximum(x @ w1.T + b1, 0.0) @ w2.T + b2
    assert out.shape == (batch, 3)
    assert jnp.allclose(out, ref, atol=2e-2, rtol=2e-2), \
        float(jnp.max(jnp.abs(out - ref)))

    # Exercise the batch-padding / slicing path with a non-multiple-of-128 batch.
    x2 = jax.random.normal(jax.random.PRNGKey(1), (300, 4), jnp.float32)
    out2 = jax.block_until_ready(simple_nn_forward(x2, params, dims))
    ref2 = jnp.maximum(x2 @ w1.T + b1, 0.0) @ w2.T + b2
    assert out2.shape == (300, 3)
    assert jnp.allclose(out2, ref2, atol=2e-2, rtol=2e-2)

    print("KERNEL_OK")
</pallas_src>

<mosaic_0001>
module attributes {stable_mosaic.version = 11 : i64} {
  func.func @_mlp_kernel(%arg0: i32, %arg1: memref<16x128xbf16, #tpu.memory_space<vmem>>, %arg2: memref<64x16xbf16, #tpu.memory_space<vmem>>, %arg3: memref<64x1xf32, #tpu.memory_space<vmem>>, %arg4: memref<8x64xbf16, #tpu.memory_space<vmem>>, %arg5: memref<8x1xf32, #tpu.memory_space<vmem>>, %arg6: memref<8x128xf32, #tpu.memory_space<vmem>>) attributes {dimension_semantics = [#tpu.dimension_semantics<parallel>], iteration_bounds = array<i64: 1>, scalar_prefetch = 0 : i64, scratch_operands = 0 : i64, tpu.core_type = #tpu.core_type<tc>, window_params = [{transform_indices = @transform_0, window_bounds = array<i64: 16, 128>}, {pipeline_mode = #tpu.pipeline_mode<synchronous>, transform_indices = @transform_1, window_bounds = array<i64: 64, 16>}, {pipeline_mode = #tpu.pipeline_mode<synchronous>, transform_indices = @transform_2, window_bounds = array<i64: 64, 1>}, {pipeline_mode = #tpu.pipeline_mode<synchronous>, transform_indices = @transform_3, window_bounds = array<i64: 8, 64>}, {pipeline_mode = #tpu.pipeline_mode<synchronous>, transform_indices = @transform_4, window_bounds = array<i64: 8, 1>}, {transform_indices = @transform_5, window_bounds = array<i64: 8, 128>}]} {
    %c0 = arith.constant 0 : index
    %c0_0 = arith.constant 0 : index
    %0 = vector.load %arg2[%c0, %c0_0] : memref<64x16xbf16, #tpu.memory_space<vmem>>, vector<64x16xbf16>
    %c0_1 = arith.constant 0 : index
    %c0_2 = arith.constant 0 : index
    %1 = vector.load %arg1[%c0_1, %c0_2] : memref<16x128xbf16, #tpu.memory_space<vmem>>, vector<16x128xbf16>
    %cst = arith.constant dense<0.000000e+00> : vector<64x128xf32>
    %2 = tpu.matmul %0, %1, %cst {dimension_numbers = #tpu.dot_dimension_numbers<[1], [0], [0], [1], [0, 0, 1, 1], [], []>} : vector<64x16xbf16>, vector<16x128xbf16>, vector<64x128xf32> -> vector<64x128xf32>
    %c0_3 = arith.constant 0 : index
    %c0_4 = arith.constant 0 : index
    %3 = vector.load %arg3[%c0_3, %c0_4] : memref<64x1xf32, #tpu.memory_space<vmem>>, vector<64x1xf32>
    %4 = vector.broadcast %3 : vector<64x1xf32> to vector<64x128xf32>
    %5 = arith.addf %2, %4 : vector<64x128xf32>
    %cst_5 = arith.constant 0.000000e+00 : f32
    %6 = vector.broadcast %cst_5 : f32 to vector<64x128xf32>
    %7 = arith.maximumf %5, %6 : vector<64x128xf32>
    %c0_6 = arith.constant 0 : index
    %c0_7 = arith.constant 0 : index
    %8 = vector.load %arg4[%c0_6, %c0_7] : memref<8x64xbf16, #tpu.memory_space<vmem>>, vector<8x64xbf16>
    %9 = arith.truncf %7 : vector<64x128xf32> to vector<64x128xbf16>
    %cst_8 = arith.constant dense<0.000000e+00> : vector<8x128xf32>
    %10 = tpu.matmul %8, %9, %cst_8 {dimension_numbers = #tpu.dot_dimension_numbers<[1], [0], [0], [1], [0, 0, 1, 1], [], []>} : vector<8x64xbf16>, vector<64x128xbf16>, vector<8x128xf32> -> vector<8x128xf32>
    %c0_9 = arith.constant 0 : index
    %c0_10 = arith.constant 0 : index
    %11 = vector.load %arg5[%c0_9, %c0_10] : memref<8x1xf32, #tpu.memory_space<vmem>>, vector<8x1xf32>
    %12 = vector.broadcast %11 : vector<8x1xf32> to vector<8x128xf32>
    %13 = arith.addf %10, %12 : vector<8x128xf32>
    %c0_11 = arith.constant 0 : index
    %c0_12 = arith.constant 0 : index
    %14 = vector.load %arg6[%c0_11, %c0_12] : memref<8x128xf32, #tpu.memory_space<vmem>>, vector<8x128xf32>
    tpu.vector_store %arg6[%c0_11, %c0_12], %13 {strides = array<i32>} : memref<8x128xf32, #tpu.memory_space<vmem>>, vector<8x128xf32>,
    return
  }
  func.func @transform_0(%arg0: i32) -> (i32, i32) {
    %c0_i32 = arith.constant 0 : i32
    %c0_i32_0 = arith.constant 0 : i32
    return %c0_i32, %arg0 : i32, i32
  }
  func.func @transform_1(%arg0: i32) -> (i32, i32) {
    %c0_i32 = arith.constant 0 : i32
    %c0_i32_0 = arith.constant 0 : i32
    %c0_i32_1 = arith.constant 0 : i32
    return %c0_i32, %c0_i32_0 : i32, i32
  }
  func.func @transform_2(%arg0: i32) -> (i32, i32) {
    %c0_i32 = arith.constant 0 : i32
    %c0_i32_0 = arith.constant 0 : i32
    %c0_i32_1 = arith.constant 0 : i32
    return %c0_i32, %c0_i32_0 : i32, i32
  }
  func.func @transform_3(%arg0: i32) -> (i32, i32) {
    %c0_i32 = arith.constant 0 : i32
    %c0_i32_0 = arith.constant 0 : i32
    %c0_i32_1 = arith.constant 0 : i32
    return %c0_i32, %c0_i32_0 : i32, i32
  }
  func.func @transform_4(%arg0: i32) -> (i32, i32) {
    %c0_i32 = arith.constant 0 : i32
    %c0_i32_0 = arith.constant 0 : i32
    %c0_i32_1 = arith.constant 0 : i32
    return %c0_i32, %c0_i32_0 : i32, i32
  }
  func.func @transform_5(%arg0: i32) -> (i32, i32) {
    %c0_i32 = arith.constant 0 : i32
    %c0_i32_0 = arith.constant 0 : i32
    return %c0_i32, %arg0 : i32, i32
  }
}

</mosaic_0001>

<bundles_post_ra>
// kernel: tpu_custom_call.1
= control target key start
LH: loop header
LB: loop body
LE: loop exit
PB: predicated region body
PF: predicated region fallthrough
CT: control target
= control target key end

     0   :  { %vm106_vm0 = vcmask 130048   ;;  %v337_v3 = vmov 0   ;;  %s423_s0 = inlined_call_operand.vmem [shape: bf16[16,128], index: 0, kind: input, shape index: {}]   ;;  %s424_s1 = inlined_call_operand.vmem [shape: bf16[64,16], index: 1, kind: input, shape index: {}]   ;;  %s425_s2 = inlined_call_operand.vmem [shape: f32[64,1], index: 2, kind: input, shape index: {}]   ;;  %s426_s3 = inlined_call_operand.vmem [shape: bf16[8,64], index: 3, kind: input, shape index: {}]   ;;  %s427_s4 = inlined_call_operand.vmem [shape: f32[8,1], index: 4, kind: input, shape index: {}]   ;;  %s428_s5 = inlined_call_operand.hbm [shape: f32[8,128], index: 5, kind: output, shape index: {}]  }
   0x1   :  { %v310_v0 = vld [vmem:[%s423_s0] sm:$0xff]   ;;  %v312_v2 = vld [vmem:[%s424_s1 + $0x8] sm:$0xff]   ;;  %308 = vset.pattern.permute.xlu0 %v337_v3  ;;  %v313_v4 = vld [vmem:[%s424_s1 + $0x10] sm:$0xff]   ;;  %309 = vset.pattern.permute.xlu1 %v337_v3 }
   0x2   :  { %v311_v1 = vld [vmem:[%s424_s1] sm:$0xff]   ;;  %282 = vmatprep.subr.bf16.mxu0 %v310_v0  ;;  %v38_v5 = vld [vmem:[%s425_s2 + $0x30] sm:$0xff]  ;;  %v39_v7 = vld [vmem:[%s425_s2 + $0x38] sm:$0xff] }
   0x3   :  { %283 = vmatpush3.bf16.msra.mxu0 %v310_v0  ;;  %284 = vmatprep.mubr.msk.bf16.mxu0 %vm106_vm0, %v311_v1  ;;  %v36_v6 = vld [vmem:[%s425_s2 + $0x20] sm:$0xff]  ;;  %v37_v8 = vld [vmem:[%s425_s2 + $0x28] sm:$0xff] }
   0x4   :  { %72 = vperm.xlu0 %308, %v38_v5   ;;  %62 = vperm.xlu1 %309, %v36_v6  }
   0x6   :  { %285 = vmatmul.mubr.msk.bf16.vlgmr.msra.gmra.mxu0 %vm106_vm0, %v312_v2 }
   0x7   :  { %288 = vmatprep.mubr.msk.bf16.mxu0 %vm106_vm0, %v313_v4 }
   0x8   :  { %10 = vsyncpa [#allocation3], 0  ;;  %v314_v9 = vld [vmem:[%s424_s1 + $0x18] sm:$0xff]   ;;  %77 = vperm.xlu0 %308, %v39_v7   ;;  %67 = vperm.xlu1 %309, %v37_v8   ;;  %v34_v10 = vld [vmem:[%s425_s2 + $0x10] sm:$0xff]  ;;  %v338_v15 = vmov 0.0   ;;  %vm339_vm1 = vmmov 0  }
   0x9   :  { %v35_v11 = vld [vmem:[%s425_s2 + $0x18] sm:$0xff]  ;;  %v32_v12 = vld [vmem:[%s425_s2] sm:$0xff]  ;;  %v33_v13 = vld [vmem:[%s425_s2 + $0x8] sm:$0xff]  ;;  %292 = vmatprep.subr.bf16.mxu1 %v338_v15  ;;  %300 = vmatprep.mubr.msk.bf16.mxu1 %vm339_vm1, %v338_v15  ;;  %vm203_vm2 = vcmask 523264   ;;  %s340_s19 = smov [#allocation2]  }
   0xa   :  { %v197_v14 = vld [vmem:[%s427_s4] sm:$0xff]  ;;  %s254_s20 = sshll.u32 %s340_s19, 4  ;;  %s255_s20 = int_to_ptr.vmem [resolvable:$true] %s254_s20 }
   0xb   :  { %v192_v52 = vld [vmem:[%s426_s3] sm:$0xf]  ;;  %s315_s21 = scalar_lea.vmem %s255_s20, 128  ;;  %p320_p1 = scmp.lt.s32.totalorder %s255_s20, %s255_s20 }
   0xc   :  { %52 = vperm.xlu0 %308, %v34_v10   ;;  %57 = vperm.xlu1 %309, %v35_v11   ;;  %p316_p0 = scmp.ne.s32.totalorder %s255_s20, %s315_s21  ;;  %p321_p2 = scmp.lt.s32.totalorder %s315_s21, %s315_s21 }
   0xe   :  { %289 = vmatmul.mubr.msk.bf16.gmra.mxu0 %vm106_vm0, %v314_v9  ;;  %p322_p3 = por %p321_p2, %p320_p1 }
  0x10   :  { %42 = vperm.xlu0 %308, %v32_v12   ;;  %47 = vperm.xlu1 %309, %v33_v13   ;;  %p323_p4 = pnand %p322_p3, %p316_p0 }
  0x14   :  { %200 = vperm.xlu0 %308, %v197_v14  }
  0x7f   :  { %v63_v16 = vpop.permute.xlu1 %62  ;;  %v73_v18 = vpop.permute.xlu0 %72 }
  0x83   :  { %v68_v21 = vpop.permute.xlu1 %67  ;;  %v78_v23 = vpop.permute.xlu0 %77 }
  0x87   :  { %v58_v27 = vpop.permute.xlu1 %57  ;;  %v53_v30 = vpop.permute.xlu0 %52 }
  0x8b   :  { %v48_v39 = vpop.permute.xlu1 %47  ;;  %v43_v42 = vpop.permute.xlu0 %42 }
  0x8f   :  { %v201_v53 = vpop.permute.xlu0 %200 }
  0xc6   :  { %v286_v17 = vpop.f32.mrf.mxu0 }
  0xc7   :  { %v162_v40 = vadd.f32 %v286_v17, %v53_v30 }
  0xc8   :  { %v153_v19 = vpop.f32.mrf.mxu0 }
  0xc9   :  { %v186_v46 = vmax.f32 %v162_v40, 0.0  ;;  %v154_v47 = vadd.f32 %v153_v19, %v43_v42 }
  0xca   :  { %v287_v20 = vpop.f32.mrf.mxu0 }
  0xcb   :  { %v165_v36 = vadd.f32 %v287_v20, %v58_v27  ;;  %v184_v50 = vmax.f32 %v154_v47, 0.0 }
  0xcc   :  { %v156_v22 = vpop.f32.mrf.mxu0 }
  0xcd   :  { %v187_v43 = vmax.f32 %v165_v36, 0.0  ;;  %v157_v44 = vadd.f32 %v156_v22, %v48_v39 }
  0xce   :  { %v290_v24 = vpop.f32.mrf.mxu0 }
  0xcf   :  { %v178_v26 = vadd.f32 %v290_v24, %v73_v18  ;;  %v194_v48 = vpack.c.bf16 %v187_v43, %v186_v46  ;;  %v185_v49 = vmax.f32 %v157_v44, 0.0 }
  0xd0   :  { %v169_v25 = vpop.f32.mrf.mxu0 }
  0xd1   :  { %v190_v32 = vmax.f32 %v178_v26, 0.0  ;;  %v170_v33 = vadd.f32 %v169_v25, %v63_v16  ;;  %v193_v51 = vpack.c.bf16 %v185_v49, %v184_v50 }
  0xd2   :  { %v291_v28 = vpop.f32.mrf.mxu0 }
  0xd3   :  { %v181_v29 = vadd.f32 %v291_v28, %v78_v23  ;;  %v188_v41 = vmax.f32 %v170_v33, 0.0 }
  0xd4   :  { %v172_v31 = vpop.f32.mrf.mxu0 }
  0xd5   :  { %v191_v34 = vmax.f32 %v181_v29, 0.0  ;;  %v173_v35 = vadd.f32 %v172_v31, %v68_v21 }
  0xd7   :  { %v189_v37 = vmax.f32 %v173_v35, 0.0  ;;  %v196_v38 = vpack.c.bf16 %v191_v34, %v190_v32 }
  0xd9   :  { %293 = vmatpush3.bf16.msra.mxu1 %v196_v38  ;;  %v195_v45 = vpack.c.bf16 %v189_v37, %v188_v41 }
  0xda   :  { %294 = vmatprep.subr.bf16.mxu1 %v338_v15 }
  0xdd   :  { %295 = vmatpush3.bf16.msra.mxu1 %v195_v45 }
  0xde   :  { %296 = vmatprep.subr.bf16.mxu1 %v338_v15 }
  0xe1   :  { %297 = vmatpush3.bf16.msra.mxu1 %v194_v48 }
  0xe2   :  { %298 = vmatprep.subr.bf16.mxu1 %v338_v15 }
  0xe5   :  { %299 = vmatpush3.bf16.msra.mxu1 %v193_v51 }
  0xe8   :  { %301 = vmatmul.mubr.msk.bf16.vlgmr.msra.gmra.mxu1 %vm203_vm2, %v192_v52 }
 0x1a8   :  { %v241_v54 = vpop.f32.mrf.mxu1 }
 0x1a9   :  { %v242_v55 = vadd.f32 %v241_v54, %v201_v53 }
 0x1aa   :  { %v302_v56 = vpop.f32.mrf.mxu1 }
 0x1ab   :  { %247 = vst [vmem:[#allocation2] sm:$0xff] %v242_v55 }
 0x1ac   :  { %v244_v57 = vpop.f32.mrf.mxu1 }
 0x1ad   :  { %326 = shalt.err (!%p323_p4)
}
 0x1ae   :  { %257 = dma.vmem_to_hbm [thread:$0]  %s255_s20, 128, %s428_s5, [#allocation3]   ;;  %v303_v58 = vpop.f32.mrf.mxu1 }
 0x1af   :  { %335 = dma.done.wait [#allocation3], 128  }
 0x1b0   :  { %336 = vsyncadd [#allocation3], 4294967168 }
 0x1b1   :  { %261 = vsyncpa [#allocation3], 1 }

</bundles_post_ra>
